<compile_context>
chip_gen: v5e
topology: v5e:2x2
jax: 0.10.0
libtpu: 0.0.40
codegen_flags: <defaults>
</compile_context>

<pallas_src>
import functools

import jax
import jax.numpy as jnp
from jax import lax
from jax.experimental import pallas as pl
from jax.experimental.pallas import tpu as pltpu

D = 20


def _fixed_hidden_mlp_kernel(x_ref, wf_ref, bf_ref, wt_ref, b_ref,
                             out_ref, abs_acc, tot_acc, *, batch, tile_b):
    i = pl.program_id(0)

    @pl.when(i == 0)
    def _init():
        abs_acc[...] = jnp.zeros_like(abs_acc)
        tot_acc[...] = jnp.zeros_like(tot_acc)

    # relu(X @ (W^T R) + (b R + 1))  ==  relu(linear(X) @ R + 1)
    h = jnp.dot(x_ref[...], wf_ref[...], preferred_element_type=jnp.float32)
    h = jnp.maximum(h + bf_ref[...], 0.0)
    # second application of the shared Linear
    h = jnp.dot(h, wt_ref[...], preferred_element_type=jnp.float32) + b_ref[...]

    # Mask rows that only exist because of batch padding (static check).
    if batch % tile_b != 0:
        row = i * tile_b + lax.broadcasted_iota(jnp.int32, h.shape, 0)
        h = jnp.where(row < batch, h, 0.0)

    abs_acc[...] += jnp.sum(jnp.abs(h))
    tot_acc[...] += jnp.sum(h)

    @pl.when(i == pl.num_programs(0) - 1)
    def _finalize():
        a = abs_acc[...]                      # (1, 1) f32, >= 0
        t = tot_acc[...]                      # (1, 1) f32
        # n = number of iterations of `while a > 1: a /= 2`, from the bits of a:
        #   a <= 1            -> n = 0
        #   a == 2**k (k>=1)  -> n = k      (stops exactly at 1, strict ">")
        #   otherwise         -> n = floor(log2(a)) + 1
        bits = pltpu.bitcast(a, jnp.int32)
        e = (bits >> 23) & 0xFF               # biased exponent
        m = bits & 0x7FFFFF                   # mantissa
        n = jnp.where(a > 1.0, (e - 127) + (m != 0).astype(jnp.int32), 0)
        # Exact 2**-n, split in two power-of-two factors so each stays normal
        # even for n up to 128.
        n1 = n >> 1
        n2 = n - n1
        s1 = pltpu.bitcast((127 - n1) << 23, jnp.float32)
        s2 = pltpu.bitcast((127 - n2) << 23, jnp.float32)
        out_ref[...] = t * s1 * s2


@functools.partial(jax.jit, static_argnames=("tile_b",))
def fixed_hidden_mlp(x, w, b, rand_weight, *, tile_b=1024):
    """x: (B, 20) f32. w: (20, 20) Linear weight (out, in). b: (20,). rand_weight: (20, 20)."""
    B, d = x.shape
    assert d == D and w.shape == (D, D) and rand_weight.shape == (D, D)

    x = x.astype(jnp.float32)
    w_t = jnp.asarray(w, jnp.float32).T                       # (in, out)
    rw = jnp.asarray(rand_weight, jnp.float32)
    bias = jnp.asarray(b, jnp.float32)

    # One-time 20x20 fusion of the first two layers (XLA, outside the kernel).
    w_fused = w_t @ rw                                        # (20, 20)
    b_fused = (bias @ rw + 1.0).reshape(1, D)                 # (1, 20)
    b_row = bias.reshape(1, D)                                # (1, 20)

    # Batch tiling: one full-size block for small B, else tiles of `tile_b`
    # rows (multiple of 8). tile_b=1024 -> ~0.5 MiB/buffer (20 lanes padded to
    # 128), well inside v7x's 64 MiB VMEM; v5e/v6e could go larger.
    if B <= tile_b:
        tb, Bp = B, B
    else:
        assert tile_b % 8 == 0
        tb = tile_b
        Bp = ((B + tb - 1) // tb) * tb
    if Bp != B:
        x = jnp.pad(x, ((0, Bp - B), (0, 0)))

    kernel = functools.partial(_fixed_hidden_mlp_kernel, batch=B, tile_b=tb)

    out = pl.pallas_call(
        kernel,
        out_shape=jax.ShapeDtypeStruct((1, 1), jnp.float32),
        grid_spec=pltpu.PrefetchScalarGridSpec(
            num_scalar_prefetch=0,
            grid=(Bp // tb,),
            in_specs=[
                pl.BlockSpec((tb, D), lambda i: (i, 0)),      # x tiles
                pl.BlockSpec((D, D), lambda i: (0, 0)),       # w_fused (resident)
                pl.BlockSpec((1, D), lambda i: (0, 0)),       # b_fused
                pl.BlockSpec((D, D), lambda i: (0, 0)),       # w_t
                pl.BlockSpec((1, D), lambda i: (0, 0)),       # bias
            ],
            out_specs=pl.BlockSpec((1, 1), lambda i: (0, 0)),
            scratch_shapes=[pltpu.VMEM((1, 1), jnp.float32),
                            pltpu.VMEM((1, 1), jnp.float32)],
        ),
        # Shared scalar accumulators -> keep the batch axis "arbitrary"
        # (avoids the 2-TensorCore accumulator race on v7x).
        compiler_params=pltpu.CompilerParams(
            dimension_semantics=("arbitrary",)),
    )(x, w_fused, b_fused, w_t, b_row)
    return out[0, 0]


def reference(x, w, b, rand_weight):
    """Pure-JAX reference in the exact (unfused) order of the PyTorch module."""
    h = x @ w.T + b
    h = jnp.maximum(h @ rand_weight + 1.0, 0.0)
    h = h @ w.T + b
    h = lax.while_loop(lambda c: jnp.sum(jnp.abs(c)) > 1.0, lambda c: c * 0.5, h)
    return jnp.sum(h)


if __name__ == "__main__":
    key = jax.random.PRNGKey(0)
    k_x, k_rw, k_w, k_b, k_x2 = jax.random.split(key, 5)

    # rand_weight = torch.rand((20, 20)) -> U[0, 1)
    rand_weight = jax.random.uniform(k_rw, (D, D), dtype=jnp.float32)
    # nn.Linear(20, 20) default init: U(-1/sqrt(fan_in), 1/sqrt(fan_in))
    bound = 1.0 / (D ** 0.5)
    w = jax.random.uniform(k_w, (D, D), jnp.float32, minval=-bound, maxval=bound)
    b = jax.random.uniform(k_b, (D,), jnp.float32, minval=-bound, maxval=bound)

    # Small case from the spec (batch=2, features=20): single grid step.
    x = jax.random.normal(k_x, (2, D), dtype=jnp.float32)
    out = jax.block_until_ready(fixed_hidden_mlp(x, w, b, rand_weight))
    ref = reference(x, w, b, rand_weight)
    assert jnp.allclose(out, ref, rtol=1e-4, atol=1e-5), (out, ref)

    # Larger batch exercising the grid, resident weights and masked tail tile.
    x2 = jax.random.normal(k_x2, (300, D), dtype=jnp.float32)
    out2 = jax.block_until_ready(fixed_hidden_mlp(x2, w, b, rand_weight, tile_b=128))
    ref2 = reference(x2, w, b, rand_weight)
    assert jnp.allclose(out2, ref2, rtol=1e-4, atol=1e-5), (out2, ref2)

    print("KERNEL_OK")
</pallas_src>

<mosaic_0001>
module attributes {stable_mosaic.version = 11 : i64} {
  func.func @_fixed_hidden_mlp_kernel(%arg0: i32, %arg1: memref<2x20xf32, #tpu.memory_space<vmem>>, %arg2: memref<20x20xf32, #tpu.memory_space<vmem>>, %arg3: memref<1x20xf32, #tpu.memory_space<vmem>>, %arg4: memref<20x20xf32, #tpu.memory_space<vmem>>, %arg5: memref<1x20xf32, #tpu.memory_space<vmem>>, %arg6: memref<1x1xf32, #tpu.memory_space<vmem>>, %arg7: memref<1x1xf32, #tpu.memory_space<vmem>>, %arg8: memref<1x1xf32, #tpu.memory_space<vmem>>) attributes {dimension_semantics = [#tpu.dimension_semantics<arbitrary>], iteration_bounds = array<i64: 1>, scalar_prefetch = 0 : i64, scratch_operands = 2 : i64, tpu.core_type = #tpu.core_type<tc>, window_params = [{transform_indices = @transform_0, window_bounds = array<i64: 2, 20>}, {pipeline_mode = #tpu.pipeline_mode<synchronous>, transform_indices = @transform_1, window_bounds = array<i64: 20, 20>}, {pipeline_mode = #tpu.pipeline_mode<synchronous>, transform_indices = @transform_2, window_bounds = array<i64: 1, 20>}, {pipeline_mode = #tpu.pipeline_mode<synchronous>, transform_indices = @transform_3, window_bounds = array<i64: 20, 20>}, {pipeline_mode = #tpu.pipeline_mode<synchronous>, transform_indices = @transform_4, window_bounds = array<i64: 1, 20>}, {pipeline_mode = #tpu.pipeline_mode<synchronous>, transform_indices = @transform_5, window_bounds = array<i64: 1, 1>}]} {
    %c0_i32 = arith.constant 0 : i32
    %0 = arith.cmpi eq, %arg0, %c0_i32 : i32
    %1 = arith.extui %0 : i1 to i32
    %c0_i32_0 = arith.constant 0 : i32
    %2 = arith.cmpi ne, %1, %c0_i32_0 : i32
    scf.if %2 {
      %cst_24 = arith.constant 0.000000e+00 : f32
      %36 = vector.broadcast %cst_24 : f32 to vector<1x1xf32>
      %c0_25 = arith.constant 0 : index
      %c0_26 = arith.constant 0 : index
      %37 = vector.load %arg7[%c0_25, %c0_26] : memref<1x1xf32, #tpu.memory_space<vmem>>, vector<1x1xf32>
      tpu.vector_store %arg7[%c0_25, %c0_26], %36 {strides = array<i32>} : memref<1x1xf32, #tpu.memory_space<vmem>>, vector<1x1xf32>,
      %cst_27 = arith.constant 0.000000e+00 : f32
      %38 = vector.broadcast %cst_27 : f32 to vector<1x1xf32>
      %c0_28 = arith.constant 0 : index
      %c0_29 = arith.constant 0 : index
      %39 = vector.load %arg8[%c0_28, %c0_29] : memref<1x1xf32, #tpu.memory_space<vmem>>, vector<1x1xf32>
      tpu.vector_store %arg8[%c0_28, %c0_29], %38 {strides = array<i32>} : memref<1x1xf32, #tpu.memory_space<vmem>>, vector<1x1xf32>,
    } else {
    }
    %c0 = arith.constant 0 : index
    %c0_1 = arith.constant 0 : index
    %3 = vector.load %arg1[%c0, %c0_1] : memref<2x20xf32, #tpu.memory_space<vmem>>, vector<2x20xf32>
    %c0_2 = arith.constant 0 : index
    %c0_3 = arith.constant 0 : index
    %4 = vector.load %arg2[%c0_2, %c0_3] : memref<20x20xf32, #tpu.memory_space<vmem>>, vector<20x20xf32>
    %cst = arith.constant dense<0.000000e+00> : vector<2x20xf32>
    %5 = tpu.matmul %3, %4, %cst {dimension_numbers = #tpu.dot_dimension_numbers<[1], [0], [0], [1], [0, 0, 1, 1], [], []>} : vector<2x20xf32>, vector<20x20xf32>, vector<2x20xf32> -> vector<2x20xf32>
    %c0_4 = arith.constant 0 : index
    %c0_5 = arith.constant 0 : index
    %6 = vector.load %arg3[%c0_4, %c0_5] : memref<1x20xf32, #tpu.memory_space<vmem>>, vector<1x20xf32>
    %7 = vector.broadcast %6 : vector<1x20xf32> to vector<2x20xf32>
    %8 = arith.addf %5, %7 : vector<2x20xf32>
    %cst_6 = arith.constant 0.000000e+00 : f32
    %9 = vector.broadcast %cst_6 : f32 to vector<2x20xf32>
    %10 = arith.maximumf %8, %9 : vector<2x20xf32>
    %c0_7 = arith.constant 0 : index
    %c0_8 = arith.constant 0 : index
    %11 = vector.load %arg4[%c0_7, %c0_8] : memref<20x20xf32, #tpu.memory_space<vmem>>, vector<20x20xf32>
    %cst_9 = arith.constant dense<0.000000e+00> : vector<2x20xf32>
    %12 = tpu.matmul %10, %11, %cst_9 {dimension_numbers = #tpu.dot_dimension_numbers<[1], [0], [0], [1], [0, 0, 1, 1], [], []>} : vector<2x20xf32>, vector<20x20xf32>, vector<2x20xf32> -> vector<2x20xf32>
    %c0_10 = arith.constant 0 : index
    %c0_11 = arith.constant 0 : index
    %13 = vector.load %arg5[%c0_10, %c0_11] : memref<1x20xf32, #tpu.memory_space<vmem>>, vector<1x20xf32>
    %14 = vector.broadcast %13 : vector<1x20xf32> to vector<2x20xf32>
    %15 = arith.addf %12, %14 : vector<2x20xf32>
    %c0_12 = arith.constant 0 : index
    %c0_13 = arith.constant 0 : index
    %16 = vector.load %arg7[%c0_12, %c0_13] : memref<1x1xf32, #tpu.memory_space<vmem>>, vector<1x1xf32>
    %17 = math.absf %15 : vector<2x20xf32>
    %18 = vector.shape_cast %17 : vector<2x20xf32> to vector<1x2x20xf32>
    %cst_14 = arith.constant dense<0.000000e+00> : vector<1xf32>
    %19 = vector.multi_reduction <add>, %18, %cst_14 [1, 2] : vector<1x2x20xf32> to vector<1xf32>
    %20 = vector.shape_cast %19 : vector<1xf32> to vector<1x1x1xf32>
    %21 = vector.extract %20[0, 0, 0] : f32 from vector<1x1x1xf32>
    %22 = vector.broadcast %21 : f32 to vector<1x1xf32>
    %23 = arith.addf %16, %22 : vector<1x1xf32>
    %c0_15 = arith.constant 0 : index
    %c0_16 = arith.constant 0 : index
    %24 = vector.load %arg7[%c0_15, %c0_16] : memref<1x1xf32, #tpu.memory_space<vmem>>, vector<1x1xf32>
    tpu.vector_store %arg7[%c0_15, %c0_16], %23 {strides = array<i32>} : memref<1x1xf32, #tpu.memory_space<vmem>>, vector<1x1xf32>,
    %c0_17 = arith.constant 0 : index
    %c0_18 = arith.constant 0 : index
    %25 = vector.load %arg8[%c0_17, %c0_18] : memref<1x1xf32, #tpu.memory_space<vmem>>, vector<1x1xf32>
    %26 = vector.shape_cast %15 : vector<2x20xf32> to vector<1x2x20xf32>
    %cst_19 = arith.constant dense<0.000000e+00> : vector<1xf32>
    %27 = vector.multi_reduction <add>, %26, %cst_19 [1, 2] : vector<1x2x20xf32> to vector<1xf32>
    %28 = vector.shape_cast %27 : vector<1xf32> to vector<1x1x1xf32>
    %29 = vector.extract %28[0, 0, 0] : f32 from vector<1x1x1xf32>
    %30 = vector.broadcast %29 : f32 to vector<1x1xf32>
    %31 = arith.addf %25, %30 : vector<1x1xf32>
    %c0_20 = arith.constant 0 : index
    %c0_21 = arith.constant 0 : index
    %32 = vector.load %arg8[%c0_20, %c0_21] : memref<1x1xf32, #tpu.memory_space<vmem>>, vector<1x1xf32>
    tpu.vector_store %arg8[%c0_20, %c0_21], %31 {strides = array<i32>} : memref<1x1xf32, #tpu.memory_space<vmem>>, vector<1x1xf32>,
    %c0_i32_22 = arith.constant 0 : i32
    %33 = arith.cmpi eq, %arg0, %c0_i32_22 : i32
    %34 = arith.extui %33 : i1 to i32
    %c0_i32_23 = arith.constant 0 : i32
    %35 = arith.cmpi ne, %34, %c0_i32_23 : i32
    scf.if %35 {
      %c0_24 = arith.constant 0 : index
      %c0_25 = arith.constant 0 : index
      %36 = vector.load %arg7[%c0_24, %c0_25] : memref<1x1xf32, #tpu.memory_space<vmem>>, vector<1x1xf32>
      %c0_26 = arith.constant 0 : index
      %c0_27 = arith.constant 0 : index
      %37 = vector.load %arg8[%c0_26, %c0_27] : memref<1x1xf32, #tpu.memory_space<vmem>>, vector<1x1xf32>
      %38 = tpu.bitcast %36 : vector<1x1xf32> -> vector<1x1xi32>
      %c23_i32 = arith.constant 23 : i32
      %39 = vector.broadcast %c23_i32 : i32 to vector<1x1xi32>
      %40 = arith.shrsi %38, %39 : vector<1x1xi32>
      %c255_i32 = arith.constant 255 : i32
      %41 = vector.broadcast %c255_i32 : i32 to vector<1x1xi32>
      %42 = arith.andi %40, %41 : vector<1x1xi32>
      %c8388607_i32 = arith.constant 8388607 : i32
      %43 = vector.broadcast %c8388607_i32 : i32 to vector<1x1xi32>
      %44 = arith.andi %38, %43 : vector<1x1xi32>
      %cst_28 = arith.constant 1.000000e+00 : f32
      %45 = vector.broadcast %cst_28 : f32 to vector<1x1xf32>
      %46 = arith.cmpf ogt, %36, %45 : vector<1x1xf32>
      %c127_i32 = arith.constant 127 : i32
      %47 = vector.broadcast %c127_i32 : i32 to vector<1x1xi32>
      %48 = arith.subi %42, %47 : vector<1x1xi32>
      %c0_i32_29 = arith.constant 0 : i32
      %49 = vector.broadcast %c0_i32_29 : i32 to vector<1x1xi32>
      %50 = arith.cmpi ne, %44, %49 : vector<1x1xi32>
      %51 = arith.extui %50 : vector<1x1xi1> to vector<1x1xi32>
      %52 = arith.addi %48, %51 : vector<1x1xi32>
      %c0_i32_30 = arith.constant 0 : i32
      %53 = vector.broadcast %c0_i32_30 : i32 to vector<1x1xi32>
      %54 = arith.select %46, %52, %53 : vector<1x1xi1>, vector<1x1xi32>
      %c1_i32 = arith.constant 1 : i32
      %55 = vector.broadcast %c1_i32 : i32 to vector<1x1xi32>
      %56 = arith.shrsi %54, %55 : vector<1x1xi32>
      %57 = arith.subi %54, %56 : vector<1x1xi32>
      %c127_i32_31 = arith.constant 127 : i32
      %58 = vector.broadcast %c127_i32_31 : i32 to vector<1x1xi32>
      %59 = arith.subi %58, %56 : vector<1x1xi32>
      %c23_i32_32 = arith.constant 23 : i32
      %60 = vector.broadcast %c23_i32_32 : i32 to vector<1x1xi32>
      %61 = arith.shli %59, %60 : vector<1x1xi32>
      %62 = tpu.bitcast %61 : vector<1x1xi32> -> vector<1x1xf32>
      %c127_i32_33 = arith.constant 127 : i32
      %63 = vector.broadcast %c127_i32_33 : i32 to vector<1x1xi32>
      %64 = arith.subi %63, %57 : vector<1x1xi32>
      %c23_i32_34 = arith.constant 23 : i32
      %65 = vector.broadcast %c23_i32_34 : i32 to vector<1x1xi32>
      %66 = arith.shli %64, %65 : vector<1x1xi32>
      %67 = tpu.bitcast %66 : vector<1x1xi32> -> vector<1x1xf32>
      %68 = arith.mulf %37, %62 : vector<1x1xf32>
      %69 = arith.mulf %68, %67 : vector<1x1xf32>
      %c0_35 = arith.constant 0 : index
      %c0_36 = arith.constant 0 : index
      %70 = vector.load %arg6[%c0_35, %c0_36] : memref<1x1xf32, #tpu.memory_space<vmem>>, vector<1x1xf32>
      tpu.vector_store %arg6[%c0_35, %c0_36], %69 {strides = array<i32>} : memref<1x1xf32, #tpu.memory_space<vmem>>, vector<1x1xf32>,
    } else {
    }
    return
  }
  func.func @transform_0(%arg0: i32) -> (i32, i32) {
    %c0_i32 = arith.constant 0 : i32
    %c0_i32_0 = arith.constant 0 : i32
    return %arg0, %c0_i32 : i32, i32
  }
  func.func @transform_1(%arg0: i32) -> (i32, i32) {
    %c0_i32 = arith.constant 0 : i32
    %c0_i32_0 = arith.constant 0 : i32
    %c0_i32_1 = arith.constant 0 : i32
    return %c0_i32, %c0_i32_0 : i32, i32
  }
  func.func @transform_2(%arg0: i32) -> (i32, i32) {
    %c0_i32 = arith.constant 0 : i32
    %c0_i32_0 = arith.constant 0 : i32
    %c0_i32_1 = arith.constant 0 : i32
    return %c0_i32, %c0_i32_0 : i32, i32
  }
  func.func @transform_3(%arg0: i32) -> (i32, i32) {
    %c0_i32 = arith.constant 0 : i32
    %c0_i32_0 = arith.constant 0 : i32
    %c0_i32_1 = arith.constant 0 : i32
    return %c0_i32, %c0_i32_0 : i32, i32
  }
  func.func @transform_4(%arg0: i32) -> (i32, i32) {
    %c0_i32 = arith.constant 0 : i32
    %c0_i32_0 = arith.constant 0 : i32
    %c0_i32_1 = arith.constant 0 : i32
    return %c0_i32, %c0_i32_0 : i32, i32
  }
  func.func @transform_5(%arg0: i32) -> (i32, i32) {
    %c0_i32 = arith.constant 0 : i32
    %c0_i32_0 = arith.constant 0 : i32
    %c0_i32_1 = arith.constant 0 : i32
    return %c0_i32, %c0_i32_0 : i32, i32
  }
}

</mosaic_0001>

<bundles_post_ra>
// kernel: fixed_hidden_mlp.1
= control target key start
LH: loop header
LB: loop body
LE: loop exit
PB: predicated region body
PF: predicated region fallthrough
CT: control target
= control target key end

     0   :  { %vm40_vm0 = vcmask 1043456   ;;  %s279_s0 = inlined_call_operand.vmem [shape: f32[2,20], index: 0, kind: input, shape index: {}]   ;;  %s280_s1 = inlined_call_operand.vmem [shape: f32[20,20], index: 1, kind: input, shape index: {}]   ;;  %s281_s2 = inlined_call_operand.vmem [shape: f32[1,20], index: 2, kind: input, shape index: {}]   ;;  %s282_s3 = inlined_call_operand.vmem [shape: f32[20,20], index: 3, kind: input, shape index: {}]   ;;  %s283_s4 = inlined_call_operand.vmem [shape: f32[1,20], index: 4, kind: input, shape index: {}]   ;;  %s284_s5 = inlined_call_operand.hbm [shape: f32[1,1], index: 5, kind: output, shape index: {}]  }
   0x1   :  { %v31_v0 = vld [vmem:[%s280_s1 + $0x10] sm:$0xf]  ;;  %v30_v1 = vld [vmem:[%s280_s1 + $0x8] sm:$0xff]  ;;  %v29_v2 = vld [vmem:[%s280_s1] sm:$0xff] }
   0x2   :  { %171 = vmatpush.msk.msra.mxu0 %vm40_vm0, %v31_v0 }
   0x3   :  { %10 = vsyncpa [#allocation5], 0  ;;  %v28_v3 = vld [vmem:[%s279_s0] sm:$0x3]  ;;  %vm36_vm1 = vcmask 162816   ;;  %v66_v5 = vld [vmem:[%s282_s3 + $0x8] sm:$0xff] }
   0x4   :  { %58 = vmatpush.msra.mxu0 %v30_v1  ;;  %v67_v4 = vld [vmem:[%s282_s3 + $0x10] sm:$0xf]  ;;  %v65_v6 = vld [vmem:[%s282_s3] sm:$0xff]  ;;  %vm100_vm2 = vcmask 156672   ;;  %vm25_vm3 = vcmask 0   ;;  %v211_v17 = vmov 0.0  }
   0x5   :  { %173 = vmatpush.msk.msra.mxu1 %vm40_vm0, %v67_v4  ;;  %v183_v7 = vld [vmem:[%s281_s2] ss:$0 sm:$0xff]  ;;  %26 = vst.msk [vmem:[#allocation2] sm:$0x1] %vm25_vm3, %v211_v17  ;;  %v212_v43 = vmov 0   ;;  %s162_s12 = sshll.u32 %s284_s5, 4  ;;  %s163_s12 = int_to_ptr.hbm [resolvable:$true] %s162_s12 }
   0x6   :  { %59 = vmatpush.msra.mxu0 %v29_v2  ;;  %v184_v11 = vld [vmem:[%s283_s4] ss:$0 sm:$0xff]  ;;  %27 = vst.msk [vmem:[#allocation3] sm:$0x1] %vm25_vm3, %v211_v17  ;;  %s213_s4 = smov [#allocation4]  }
   0x7   :  { %172 = vmatmul.msk.f32.vlgmr.msra.gmra.mxu0 %vm36_vm1, %v28_v3  ;;  %92 = vmatpush.msra.mxu1 %v66_v5  ;;  %s160_s9 = sshll.u32 %s213_s4, 4  ;;  %s161_s9 = int_to_ptr.vmem [resolvable:$true] %s160_s9 }
   0x9   :  { %93 = vmatpush.msra.mxu1 %v65_v6 }
   0xc   :  { %v98_v32 = vld [vmem:[#allocation2] sm:$0x1] }
   0xd   :  { %v115_v35 = vld [vmem:[#allocation3] sm:$0x1] }
  0x84   :  { %v61_v8 = vpop.f32.mrf.mxu0 }
  0x85   :  { %v62_v9 = vadd.f32 %v183_v7, %v61_v8 }
  0x87   :  { %v64_v10 = vmax.f32 %v62_v9, 0.0 }
  0x89   :  { %174 = vmatmul.msk.f32.vlgmr.msra.gmra.mxu1 %vm36_vm1, %v64_v10 }
 0x106   :  { %v95_v12 = vpop.f32.mrf.mxu1 }
 0x107   :  { %v96_v13 = vadd.f32 %v184_v11, %v95_v12 }
 0x109   :  { %v99_v14 = vand.u32 2147483647, %v96_v13  ;;  %v116_v16 = vsel %vm100_vm2, %v96_v13, 0.0 }
 0x10b   :  { %v101_v15 = vsel %vm100_vm2, %v99_v14, 0.0 }
 0x10c   :  { %102 = vadd.xlane.f32.xlu0 %v101_v15 }
 0x114   :  { %117 = vadd.xlane.f32.xlu0 %v116_v16 }
 0x17f   :  { %v103_v18 = vpop.xlane.xlu0 %102 }
 0x180   :  { %v104_v19 = vrot.slane %v103_v18, 4 }
 0x182   :  { %v105_v20 = vadd.f32 %v104_v19, %v103_v18 }
 0x184   :  { %v106_v21 = vrot.slane %v105_v20, 2 }
 0x186   :  { %v107_v22 = vadd.f32 %v106_v21, %v105_v20 }
 0x187   :  { %v118_v23 = vpop.xlane.xlu0 %117 }
 0x188   :  { %v119_v24 = vrot.slane %v118_v23, 4  ;;  %v108_v25 = vrot.slane %v107_v22, 1 }
 0x18a   :  { %v120_v26 = vadd.f32 %v119_v24, %v118_v23  ;;  %v109_v27 = vadd.f32 %v108_v25, %v107_v22 }
 0x18c   :  { %v121_v28 = vrot.slane %v120_v26, 2  ;;  %176 = vpush %v109_v27 }
 0x18e   :  { %v122_v29 = vadd.f32 %v121_v28, %v120_v26 }
 0x190   :  { %v123_v30 = vrot.slane %v122_v29, 1 }
 0x192   :  { %v124_v31 = vadd.f32 %v123_v30, %v122_v29 }
 0x194   :  { %178 = vpush %v124_v31 }
 0x1bd   :  { %s177_s2 = spop %176 }
 0x1be   :  { %v111_v33 = vstv %s177_s2 }
 0x1bf   :  { %v112_v34 = vadd.f32 %v111_v33, %v98_v32 }
 0x1c1   :  { %114 = vst.msk [vmem:[#allocation2] sm:$0x1] %vm25_vm3, %v112_v34 }
 0x1c5   :  { %s179_s3 = spop %178 }
 0x1c6   :  { %v126_v36 = vstv %s179_s3 }
 0x1c7   :  { %v127_v37 = vadd.f32 %v126_v36, %v115_v35 }
 0x1c8   :  { %v132_v38 = vld [vmem:[#allocation2] sm:$0x1] }
 0x1c9   :  { %128 = vst.msk [vmem:[#allocation3] sm:$0x1] %vm25_vm3, %v127_v37  ;;  %v135_v39 = vshra.s32 %v132_v38, 23  ;;  %v137_v40 = vand.u32 8388607, %v132_v38  ;;  %vm138_vm5 = vcmp.gt.f32.partialorder %v132_v38, 1.0 }
 0x1cb   :  { %v136_v41 = vand.u32 255, %v135_v39  ;;  %vm140_vm4 = vcmp.ne.s32.totalorder %v137_v40, 0 }
 0x1cc   :  { %v141_v44 = vsel %vm140_vm4, 1, %v212_v43 }
 0x1cd   :  { %v175_v42 = vadd.s32 4294967169, %v136_v41 }
 0x1cf   :  { %v142_v45 = vadd.s32 %v175_v42, %v141_v44 }
 0x1d0   :  { %v133_v52 = vld [vmem:[#allocation3] sm:$0x1] }
 0x1d1   :  { %v143_v46 = vsel %vm138_vm5, %v142_v45, 0 }
 0x1d2   :  { %v144_v47 = vshra.s32 %v143_v46, 1 }
 0x1d4   :  { %v145_v48 = vsub.s32 %v143_v46, %v144_v47  ;;  %v146_v49 = vsub.s32 127, %v144_v47 }
 0x1d6   :  { %v147_v50 = vshll.u32 %v146_v49, 23  ;;  %v149_v51 = vsub.s32 127, %v145_v48 }
 0x1d8   :  { %v150_v53 = vshll.u32 %v149_v51, 23  ;;  %v152_v54 = vmul.f32 %v147_v50, %v133_v52 }
 0x1da   :  { %v153_v55 = vmul.f32 %v152_v54, %v150_v53 }
 0x1dc   :  { %154 = vst.msk [vmem:[#allocation4] sm:$0x1] %vm25_vm3, %v153_v55 }
 0x1dd   :  { %165 = dma.vmem_to_hbm [thread:$0]  %s161_s9, 16, %s163_s12, [#allocation5]  }
 0x1de   :  { %209 = dma.done.wait [#allocation5], 16  }
 0x1df   :  { %210 = vsyncadd [#allocation5], 4294967280 }
 0x1e0   :  { %170 = vsyncpa [#allocation5], 1 }

</bundles_post_ra>
